<compile_context>
chip_gen: v6e
topology: v6e:2x2x1
jax: 0.10.0
libtpu: 0.0.40
codegen_flags: <defaults>
</compile_context>

<pallas_src>
import functools
import math

import jax
import jax.numpy as jnp
from jax.experimental import pallas as pl
from jax.experimental.pallas import tpu as pltpu


def _mha_kernel(x_ref, mask_ref, wqkv_ref, bqkv_ref, wot_ref, bo_ref, out_ref,
                *, n_heads, block_b, T, D):
    dh = D // n_heads
    M = block_b * T

    # ---- Fused QKV projection: one (M, D) @ (D, 3D) bf16 MXU matmul, f32 acc.
    x = x_ref[...].reshape(M, D)                                   # bf16 (host cast)
    qkv = jnp.dot(x, wqkv_ref[...],
                  preferred_element_type=jnp.float32) + bqkv_ref[...]
    # bf16 operands for the attention matmuls; keep batch rows batched (3-D einsums).
    qkv = qkv.astype(jnp.bfloat16).reshape(block_b, T, 3 * D)

    m = mask_ref[0]                                                # (T, T) additive mask
    acc = jnp.zeros((M, D), jnp.float32)

    # Short static loop over heads; each iteration is batched over the block's
    # batch rows, so the MXU sees back-to-back (T, dh) x (dh, T) matmuls and
    # only 3*n_heads half-lane slices are paid (independent of block_b).
    for h in range(n_heads):
        c0 = h * dh
        qh = qkv[:, :, 0 * D + c0:0 * D + c0 + dh]                 # (block_b, T, dh)
        kh = qkv[:, :, 1 * D + c0:1 * D + c0 + dh]
        vh = qkv[:, :, 2 * D + c0:2 * D + c0 + dh]

        # Scores: 1/sqrt(dh) already folded into Wq/bq host-side.
        s = jnp.einsum('btd,bsd->bts', qh, kh,
                       preferred_element_type=jnp.float32) + m     # (block_b, T, T) f32

        # Numerically stable softmax in f32; EUP reciprocal is ~free.
        s = s - jnp.max(s, axis=-1, keepdims=True)
        p = jnp.exp(s)
        attn = (p * pl.reciprocal(jnp.sum(p, axis=-1, keepdims=True),
                                  approx=True)).astype(jnp.bfloat16)

        ctx_h = jnp.einsum('bts,bsd->btd', attn, vh,
                           preferred_element_type=jnp.float32)     # (block_b, T, dh)

        # Output projection without concatenating heads along the lane axis:
        # accumulate the per-head partial (M, dh) @ (dh, D) matmul.
        acc = acc + jnp.dot(ctx_h.reshape(M, dh).astype(jnp.bfloat16),
                            wot_ref[c0:c0 + dh, :],
                            preferred_element_type=jnp.float32)

    acc = acc + bo_ref[...]
    out_ref[...] = acc.reshape(block_b, T, D).astype(out_ref.dtype)


def _pick_block_b(B, T, max_rows=1024):
    """Largest divisor of B with block_b*T <= max_rows, keeping >= 2 grid steps
    whenever B allows it (so both v7x TensorCores get work)."""
    best = 1
    for cand in range(1, B + 1):
        if B % cand:
            continue
        if cand * T > max_rows:
            continue
        if B >= 2 and B // cand < 2:
            continue
        best = cand
    return best


def _vmem_limit_bytes(block_b, T, D, n_heads):
    """Generous scoped-VMEM estimate (double-buffered IO + resident weights +
    f32 working set) with 2x headroom, clamped to [32 MiB, 64 MiB]."""
    M = block_b * T
    io = 2 * M * D * 2 + 2 * M * D * 4            # x (bf16) + out (f32), double-buffered
    wts = 2 * (4 * D * D * 2 + 4 * D * 4)         # fused bf16 weights + f32 biases
    msk = 2 * T * T * 4
    work = (M * 3 * D * (4 + 2)                   # qkv f32 + bf16 copy
            + 3 * block_b * T * T * 4             # s / p / attn (per head, worst case)
            + block_b * T * (D // n_heads) * 4    # ctx_h
            + M * D * 4)                          # output accumulator
    est = io + wts + msk + work
    return int(min(64 * 2 ** 20, max(32 * 2 ** 20, 2 * est)))


def multi_head_attention(x, mask, params, n_heads, block_b=None):
    """x: (B, T, D) f32, mask: (1, T, T) f32 (additive). Returns (B, T, D) f32."""
    B, T, D = x.shape
    dh = D // n_heads
    scale = 1.0 / math.sqrt(dh)

    if block_b is None:
        block_b = _pick_block_b(B, T)
    assert B % block_b == 0

    # Host-side (one-off) weight prep:
    #   * y = x @ W.T + b  ->  pre-transpose and fuse Q/K/V along the output dim,
    #   * fold the 1/sqrt(dh) scale into the Q projection (weight AND bias),
    #   * bf16 MXU operands; small biases stay f32 and lane-dense.
    wqkv_t = jnp.concatenate(
        [params["wq"].T * scale, params["wk"].T, params["wv"].T],
        axis=1).astype(jnp.bfloat16)                                    # (D, 3D)
    bqkv = jnp.concatenate(
        [params["bq"] * scale, params["bk"], params["bv"]]
    ).reshape(1, 3 * D).astype(jnp.float32)                             # (1, 3D)
    wot = params["wo"].T.astype(jnp.bfloat16)                           # (D, D)
    bo2 = params["bo"].reshape(1, D).astype(jnp.float32)                # (1, D)
    x_bf = x.astype(jnp.bfloat16)
    mask_f = mask.astype(jnp.float32)   # single (1, T, T) mask, broadcast over batch/heads

    kernel = functools.partial(_mha_kernel, n_heads=n_heads,
                               block_b=block_b, T=T, D=D)

    return pl.pallas_call(
        kernel,
        out_shape=jax.ShapeDtypeStruct((B, T, D), jnp.float32),
        grid_spec=pltpu.PrefetchScalarGridSpec(
            num_scalar_prefetch=0,
            grid=(B // block_b,),
            in_specs=[
                pl.BlockSpec((block_b, T, D), lambda i: (i, 0, 0)),     # x (bf16)
                pl.BlockSpec((1, T, T), lambda i: (0, 0, 0)),           # additive mask (f32)
                pl.BlockSpec((D, 3 * D), lambda i: (0, 0)),             # fused Wqkv^T (bf16)
                pl.BlockSpec((1, 3 * D), lambda i: (0, 0)),             # fused bias (f32)
                pl.BlockSpec((D, D), lambda i: (0, 0)),                 # Wo^T (bf16)
                pl.BlockSpec((1, D), lambda i: (0, 0)),                 # bo (f32)
            ],
            out_specs=pl.BlockSpec((block_b, T, D), lambda i: (i, 0, 0)),
        ),
        compiler_params=pltpu.CompilerParams(
            dimension_semantics=("parallel",),
            vmem_limit_bytes=_vmem_limit_bytes(block_b, T, D, n_heads)),
    )(x_bf, mask_f, wqkv_t, bqkv, wot, bo2)


def _reference(x, mask, params, n_heads):
    B, T, D = x.shape
    dh = D // n_heads
    q = (x @ params["wq"].T + params["bq"]).reshape(B, T, n_heads, dh).transpose(0, 2, 1, 3)
    k = (x @ params["wk"].T + params["bk"]).reshape(B, T, n_heads, dh).transpose(0, 2, 1, 3)
    v = (x @ params["wv"].T + params["bv"]).reshape(B, T, n_heads, dh).transpose(0, 2, 1, 3)
    scores = jnp.einsum("bhtd,bhsd->bhts", q, k) / math.sqrt(dh) + mask[:, None, :, :]
    attn = jax.nn.softmax(scores, axis=-1)
    ctx = jnp.einsum("bhts,bhsd->bhtd", attn, v).transpose(0, 2, 1, 3).reshape(B, T, D)
    return ctx @ params["wo"].T + params["bo"]


if __name__ == "__main__":
    B, T, D, H = 2, 64, 128, 2   # small shapes consistent with the module's forward

    key = jax.random.PRNGKey(0)
    keys = jax.random.split(key, 9)
    s = 1.0 / math.sqrt(D)
    params = {
        "wq": jax.random.uniform(keys[0], (D, D), jnp.float32, -s, s),
        "bq": jax.random.uniform(keys[1], (D,), jnp.float32, -s, s),
        "wk": jax.random.uniform(keys[2], (D, D), jnp.float32, -s, s),
        "bk": jax.random.uniform(keys[3], (D,), jnp.float32, -s, s),
        "wv": jax.random.uniform(keys[4], (D, D), jnp.float32, -s, s),
        "bv": jax.random.uniform(keys[5], (D,), jnp.float32, -s, s),
        "wo": jax.random.uniform(keys[6], (D, D), jnp.float32, -s, s),
        "bo": jax.random.uniform(keys[7], (D,), jnp.float32, -s, s),
    }

    x = jax.random.normal(keys[8], (B, T, D), jnp.float32)
    # Additive attention mask (causal; large-negative instead of -inf for clean numerics).
    causal = jnp.tril(jnp.ones((T, T), jnp.float32))
    mask = jnp.where(causal == 1.0, 0.0, -1e9)[None, :, :]   # (1, T, T)

    out = multi_head_attention(x, mask, params, H)
    out = jax.block_until_ready(out)

    ref = _reference(x, mask, params, H)
    assert out.shape == (B, T, D)
    err = float(jnp.max(jnp.abs(out - ref)))
    # bf16 MXU operands with f32 accumulation: tolerance loosened accordingly.
    assert err < 2.5e-2, f"mismatch vs pure-JAX reference (max abs err={err})"

    print("KERNEL_OK")
</pallas_src>

<mosaic_0001>
module attributes {stable_mosaic.version = 11 : i64} {
  func.func @_mha_kernel(%arg0: i32, %arg1: memref<1x64x128xbf16, #tpu.memory_space<vmem>>, %arg2: memref<1x64x64xf32, #tpu.memory_space<vmem>>, %arg3: memref<128x384xbf16, #tpu.memory_space<vmem>>, %arg4: memref<1x384xf32, #tpu.memory_space<vmem>>, %arg5: memref<128x128xbf16, #tpu.memory_space<vmem>>, %arg6: memref<1x128xf32, #tpu.memory_space<vmem>>, %arg7: memref<1x64x128xf32, #tpu.memory_space<vmem>>) attributes {dimension_semantics = [#tpu.dimension_semantics<parallel>], iteration_bounds = array<i64: 2>, scalar_prefetch = 0 : i64, scratch_operands = 0 : i64, tpu.core_type = #tpu.core_type<tc>, window_params = [{transform_indices = @transform_0, window_bounds = array<i64: 1, 64, 128>}, {pipeline_mode = #tpu.pipeline_mode<synchronous>, transform_indices = @transform_1, window_bounds = array<i64: 1, 64, 64>}, {pipeline_mode = #tpu.pipeline_mode<synchronous>, transform_indices = @transform_2, window_bounds = array<i64: 128, 384>}, {pipeline_mode = #tpu.pipeline_mode<synchronous>, transform_indices = @transform_3, window_bounds = array<i64: 1, 384>}, {pipeline_mode = #tpu.pipeline_mode<synchronous>, transform_indices = @transform_4, window_bounds = array<i64: 128, 128>}, {pipeline_mode = #tpu.pipeline_mode<synchronous>, transform_indices = @transform_5, window_bounds = array<i64: 1, 128>}, {transform_indices = @transform_6, window_bounds = array<i64: 1, 64, 128>}]} {
    %c0 = arith.constant 0 : index
    %c0_0 = arith.constant 0 : index
    %c0_1 = arith.constant 0 : index
    %0 = vector.load %arg1[%c0, %c0_0, %c0_1] : memref<1x64x128xbf16, #tpu.memory_space<vmem>>, vector<1x64x128xbf16>
    %1 = vector.shape_cast %0 : vector<1x64x128xbf16> to vector<64x128xbf16>
    %c0_2 = arith.constant 0 : index
    %c0_3 = arith.constant 0 : index
    %2 = vector.load %arg3[%c0_2, %c0_3] : memref<128x384xbf16, #tpu.memory_space<vmem>>, vector<128x384xbf16>
    %cst = arith.constant dense<0.000000e+00> : vector<64x384xf32>
    %3 = tpu.matmul %1, %2, %cst {dimension_numbers = #tpu.dot_dimension_numbers<[1], [0], [0], [1], [0, 0, 1, 1], [], []>} : vector<64x128xbf16>, vector<128x384xbf16>, vector<64x384xf32> -> vector<64x384xf32>
    %c0_4 = arith.constant 0 : index
    %c0_5 = arith.constant 0 : index
    %4 = vector.load %arg4[%c0_4, %c0_5] : memref<1x384xf32, #tpu.memory_space<vmem>>, vector<1x384xf32>
    %5 = vector.broadcast %4 : vector<1x384xf32> to vector<64x384xf32>
    %6 = arith.addf %3, %5 : vector<64x384xf32>
    %7 = arith.truncf %6 : vector<64x384xf32> to vector<64x384xbf16>
    %8 = vector.shape_cast %7 : vector<64x384xbf16> to vector<1x64x384xbf16>
    %c0_6 = arith.constant 0 : index
    %c0_7 = arith.constant 0 : index
    %c0_8 = arith.constant 0 : index
    %9 = vector.load %arg2[%c0_6, %c0_7, %c0_8] : memref<1x64x64xf32, #tpu.memory_space<vmem>>, vector<1x64x64xf32>
    %10 = vector.shape_cast %9 : vector<1x64x64xf32> to vector<64x64xf32>
    %cst_9 = arith.constant 0.000000e+00 : f32
    %11 = vector.broadcast %cst_9 : f32 to vector<64x128xf32>
    %12 = vector.extract_strided_slice %8 {offsets = [0, 0, 0], sizes = [1, 64, 64], strides = [1, 1, 1]} : vector<1x64x384xbf16> to vector<1x64x64xbf16>
    %13 = vector.extract_strided_slice %8 {offsets = [0, 0, 128], sizes = [1, 64, 64], strides = [1, 1, 1]} : vector<1x64x384xbf16> to vector<1x64x64xbf16>
    %14 = vector.extract_strided_slice %8 {offsets = [0, 0, 256], sizes = [1, 64, 64], strides = [1, 1, 1]} : vector<1x64x384xbf16> to vector<1x64x64xbf16>
    "tpu.trace_start"() <{level = 10 : i32, message = "btd,bsd->bts"}> : () -> ()
    %cst_10 = arith.constant dense<0.000000e+00> : vector<1x64x64xf32>
    %15 = tpu.matmul %12, %13, %cst_10 {dimension_numbers = #tpu.dot_dimension_numbers<[2], [2], [1], [1], [0, 0, 0, 1, 1, 1], [0], [0]>} : vector<1x64x64xbf16>, vector<1x64x64xbf16>, vector<1x64x64xf32> -> vector<1x64x64xf32>
    "tpu.trace_stop"() : () -> ()
    %16 = vector.shape_cast %10 : vector<64x64xf32> to vector<1x64x64xf32>
    %17 = arith.addf %15, %16 : vector<1x64x64xf32>
    %cst_11 = arith.constant dense<0xFF800000> : vector<1x64xf32>
    %18 = vector.multi_reduction <maximumf>, %17, %cst_11 [2] : vector<1x64x64xf32> to vector<1x64xf32>
    %19 = vector.shape_cast %18 : vector<1x64xf32> to vector<1x64x1xf32>
    %20 = vector.broadcast %19 : vector<1x64x1xf32> to vector<1x64x64xf32>
    %21 = arith.subf %17, %20 : vector<1x64x64xf32>
    %22 = math.exp %21 : vector<1x64x64xf32>
    %cst_12 = arith.constant dense<0.000000e+00> : vector<1x64xf32>
    %23 = vector.multi_reduction <add>, %22, %cst_12 [2] : vector<1x64x64xf32> to vector<1x64xf32>
    %24 = vector.shape_cast %23 : vector<1x64xf32> to vector<1x64x1xf32>
    %25 = tpu.reciprocal %24 {approx = true} : vector<1x64x1xf32> -> vector<1x64x1xf32>
    %26 = vector.broadcast %25 : vector<1x64x1xf32> to vector<1x64x64xf32>
    %27 = arith.mulf %22, %26 : vector<1x64x64xf32>
    %28 = arith.truncf %27 : vector<1x64x64xf32> to vector<1x64x64xbf16>
    "tpu.trace_start"() <{level = 10 : i32, message = "bts,bsd->btd"}> : () -> ()
    %cst_13 = arith.constant dense<0.000000e+00> : vector<1x64x64xf32>
    %29 = tpu.matmul %28, %14, %cst_13 {dimension_numbers = #tpu.dot_dimension_numbers<[2], [1], [1], [2], [0, 0, 0, 1, 1, 2], [0], [0]>} : vector<1x64x64xbf16>, vector<1x64x64xbf16>, vector<1x64x64xf32> -> vector<1x64x64xf32>
    "tpu.trace_stop"() : () -> ()
    %30 = vector.shape_cast %29 : vector<1x64x64xf32> to vector<64x64xf32>
    %31 = arith.truncf %30 : vector<64x64xf32> to vector<64x64xbf16>
    %c0_14 = arith.constant 0 : index
    %c0_15 = arith.constant 0 : index
    %32 = vector.load %arg5[%c0_14, %c0_15] : memref<128x128xbf16, #tpu.memory_space<vmem>>, vector<64x128xbf16>
    %cst_16 = arith.constant dense<0.000000e+00> : vector<64x128xf32>
    %33 = tpu.matmul %31, %32, %cst_16 {dimension_numbers = #tpu.dot_dimension_numbers<[1], [0], [0], [1], [0, 0, 1, 1], [], []>} : vector<64x64xbf16>, vector<64x128xbf16>, vector<64x128xf32> -> vector<64x128xf32>
    %34 = arith.addf %11, %33 : vector<64x128xf32>
    %35 = vector.extract_strided_slice %8 {offsets = [0, 0, 64], sizes = [1, 64, 64], strides = [1, 1, 1]} : vector<1x64x384xbf16> to vector<1x64x64xbf16>
    %36 = vector.extract_strided_slice %8 {offsets = [0, 0, 192], sizes = [1, 64, 64], strides = [1, 1, 1]} : vector<1x64x384xbf16> to vector<1x64x64xbf16>
    %37 = vector.extract_strided_slice %8 {offsets = [0, 0, 320], sizes = [1, 64, 64], strides = [1, 1, 1]} : vector<1x64x384xbf16> to vector<1x64x64xbf16>
    "tpu.trace_start"() <{level = 10 : i32, message = "btd,bsd->bts"}> : () -> ()
    %cst_17 = arith.constant dense<0.000000e+00> : vector<1x64x64xf32>
    %38 = tpu.matmul %35, %36, %cst_17 {dimension_numbers = #tpu.dot_dimension_numbers<[2], [2], [1], [1], [0, 0, 0, 1, 1, 1], [0], [0]>} : vector<1x64x64xbf16>, vector<1x64x64xbf16>, vector<1x64x64xf32> -> vector<1x64x64xf32>
    "tpu.trace_stop"() : () -> ()
    %39 = vector.shape_cast %10 : vector<64x64xf32> to vector<1x64x64xf32>
    %40 = arith.addf %38, %39 : vector<1x64x64xf32>
    %cst_18 = arith.constant dense<0xFF800000> : vector<1x64xf32>
    %41 = vector.multi_reduction <maximumf>, %40, %cst_18 [2] : vector<1x64x64xf32> to vector<1x64xf32>
    %42 = vector.shape_cast %41 : vector<1x64xf32> to vector<1x64x1xf32>
    %43 = vector.broadcast %42 : vector<1x64x1xf32> to vector<1x64x64xf32>
    %44 = arith.subf %40, %43 : vector<1x64x64xf32>
    %45 = math.exp %44 : vector<1x64x64xf32>
    %cst_19 = arith.constant dense<0.000000e+00> : vector<1x64xf32>
    %46 = vector.multi_reduction <add>, %45, %cst_19 [2] : vector<1x64x64xf32> to vector<1x64xf32>
    %47 = vector.shape_cast %46 : vector<1x64xf32> to vector<1x64x1xf32>
    %48 = tpu.reciprocal %47 {approx = true} : vector<1x64x1xf32> -> vector<1x64x1xf32>
    %49 = vector.broadcast %48 : vector<1x64x1xf32> to vector<1x64x64xf32>
    %50 = arith.mulf %45, %49 : vector<1x64x64xf32>
    %51 = arith.truncf %50 : vector<1x64x64xf32> to vector<1x64x64xbf16>
    "tpu.trace_start"() <{level = 10 : i32, message = "bts,bsd->btd"}> : () -> ()
    %cst_20 = arith.constant dense<0.000000e+00> : vector<1x64x64xf32>
    %52 = tpu.matmul %51, %37, %cst_20 {dimension_numbers = #tpu.dot_dimension_numbers<[2], [1], [1], [2], [0, 0, 0, 1, 1, 2], [0], [0]>} : vector<1x64x64xbf16>, vector<1x64x64xbf16>, vector<1x64x64xf32> -> vector<1x64x64xf32>
    "tpu.trace_stop"() : () -> ()
    %53 = vector.shape_cast %52 : vector<1x64x64xf32> to vector<64x64xf32>
    %54 = arith.truncf %53 : vector<64x64xf32> to vector<64x64xbf16>
    %c64 = arith.constant 64 : index
    %c0_21 = arith.constant 0 : index
    %55 = vector.load %arg5[%c64, %c0_21] : memref<128x128xbf16, #tpu.memory_space<vmem>>, vector<64x128xbf16>
    %cst_22 = arith.constant dense<0.000000e+00> : vector<64x128xf32>
    %56 = tpu.matmul %54, %55, %cst_22 {dimension_numbers = #tpu.dot_dimension_numbers<[1], [0], [0], [1], [0, 0, 1, 1], [], []>} : vector<64x64xbf16>, vector<64x128xbf16>, vector<64x128xf32> -> vector<64x128xf32>
    %57 = arith.addf %34, %56 : vector<64x128xf32>
    %c0_23 = arith.constant 0 : index
    %c0_24 = arith.constant 0 : index
    %58 = vector.load %arg6[%c0_23, %c0_24] : memref<1x128xf32, #tpu.memory_space<vmem>>, vector<1x128xf32>
    %59 = vector.broadcast %58 : vector<1x128xf32> to vector<64x128xf32>
    %60 = arith.addf %57, %59 : vector<64x128xf32>
    %61 = vector.shape_cast %60 : vector<64x128xf32> to vector<1x64x128xf32>
    %c0_25 = arith.constant 0 : index
    %c0_26 = arith.constant 0 : index
    %c0_27 = arith.constant 0 : index
    %62 = vector.load %arg7[%c0_25, %c0_26, %c0_27] : memref<1x64x128xf32, #tpu.memory_space<vmem>>, vector<1x64x128xf32>
    tpu.vector_store %arg7[%c0_25, %c0_26, %c0_27], %61 {strides = array<i32>} : memref<1x64x128xf32, #tpu.memory_space<vmem>>, vector<1x64x128xf32>,
    return
  }
  func.func @transform_0(%arg0: i32) -> (i32, i32, i32) {
    %c0_i32 = arith.constant 0 : i32
    %c0_i32_0 = arith.constant 0 : i32
    %c0_i32_1 = arith.constant 0 : i32
    return %arg0, %c0_i32, %c0_i32_0 : i32, i32, i32
  }
  func.func @transform_1(%arg0: i32) -> (i32, i32, i32) {
    %c0_i32 = arith.constant 0 : i32
    %c0_i32_0 = arith.constant 0 : i32
    %c0_i32_1 = arith.constant 0 : i32
    %c0_i32_2 = arith.constant 0 : i32
    return %c0_i32, %c0_i32_0, %c0_i32_1 : i32, i32, i32
  }
  func.func @transform_2(%arg0: i32) -> (i32, i32) {
    %c0_i32 = arith.constant 0 : i32
    %c0_i32_0 = arith.constant 0 : i32
    %c0_i32_1 = arith.constant 0 : i32
    return %c0_i32, %c0_i32_0 : i32, i32
  }
  func.func @transform_3(%arg0: i32) -> (i32, i32) {
    %c0_i32 = arith.constant 0 : i32
    %c0_i32_0 = arith.constant 0 : i32
    %c0_i32_1 = arith.constant 0 : i32
    return %c0_i32, %c0_i32_0 : i32, i32
  }
  func.func @transform_4(%arg0: i32) -> (i32, i32) {
    %c0_i32 = arith.constant 0 : i32
    %c0_i32_0 = arith.constant 0 : i32
    %c0_i32_1 = arith.constant 0 : i32
    return %c0_i32, %c0_i32_0 : i32, i32
  }
  func.func @transform_5(%arg0: i32) -> (i32, i32) {
    %c0_i32 = arith.constant 0 : i32
    %c0_i32_0 = arith.constant 0 : i32
    %c0_i32_1 = arith.constant 0 : i32
    return %c0_i32, %c0_i32_0 : i32, i32
  }
  func.func @transform_6(%arg0: i32) -> (i32, i32, i32) {
    %c0_i32 = arith.constant 0 : i32
    %c0_i32_0 = arith.constant 0 : i32
    %c0_i32_1 = arith.constant 0 : i32
    return %arg0, %c0_i32, %c0_i32_0 : i32, i32, i32
  }
}

</mosaic_0001>

<bundles_post_ra>
// kernel: tpu_custom_call.1
= control target key start
LH: loop header
LB: loop body
LE: loop exit
PB: predicated region body
PF: predicated region fallthrough
CT: control target
= control target key end

     0   :  { %11 = vsyncpa [#allocation3], 0  ;;  %s2772_s0 = inlined_call_operand.hbm [shape: bf16[2,64,128], index: 0, kind: input, shape index: {}]   ;;  %s2773_s1 = inlined_call_operand.hbm [shape: f32[1,64,64], index: 1, kind: input, shape index: {}]   ;;  %s2774_s2 = inlined_call_operand.hbm [shape: bf16[128,384], index: 2, kind: input, shape index: {}]   ;;  %s2775_s3 = inlined_call_operand.vmem [shape: f32[1,384], index: 3, kind: input, shape index: {}]   ;;  %s2776_s4 = inlined_call_operand.hbm [shape: bf16[128,128], index: 4, kind: input, shape index: {}]   ;;  %s2777_s5 = inlined_call_operand.vmem [shape: f32[1,128], index: 5, kind: input, shape index: {}]   ;;  %s2778_s6 = inlined_call_operand.hbm [shape: f32[2,64,128], index: 6, kind: output, shape index: {}]  }
   0x1   :  { %13 = vsyncpa [#allocation3 + $0x1], 0 }
   0x2   :  { %14 = vsyncpa [#allocation6], 0 }
   0x3   :  { %15 = vsyncpa [#allocation9], 0 }
   0x4   :  { %16 = vsyncpa [#allocation4], 0 }
   0x5   :  { %18 = vsyncpa [#allocation4 + $0x1], 0  ;;  %s2300_s21 = smov 0   ;;  %s2302_s22 = smov 0  }
   0x6   :  { %s2304_s23 = smov 0   ;;  %s2306_s24 = smov 0  }
   0x7 LB: > { %s2321_s25 = sadd.s32 4294967295, %s2248_s24   ;;  %s1604_s26 = sadd.s32 4294967294, %s2248_s24   ;;  %s2248_s24 = sphi %s2306_s24, %s2806_s24   ;;  %s2244_s23 = sphi %s2304_s23, %s2805_s23   ;;  %s2240_s22 = sphi %s2302_s22, %s2804_s22   ;;  %s2236_s21 = sphi %s2300_s21, %s2803_s21  }
   0x8   : > { %p44_p0 = scmp.ne.s32.totalorder %s2240_s22, %s2236_s21  ;;  %p2779_p1 = scmp.eq.s32.totalorder %s2321_s25, 0 }
   0x9   : > { %p179_p3 = scmp.eq.s32.totalorder %s1604_s26, 1  ;;  %p1605_p5 = scmp.ge.s32.totalorder %s2248_s24, 1 }
   0xa   : > { %p2330_p4 = por %p2779_p1, %p44_p0  ;;  %p186_p7 = scmp.lt.s32.totalorder %s2248_s24, 3 }
   0xb   : > { %p2335_p6 = por %p179_p3, %p44_p0  ;;  %s2250_s30 = smov [#allocation5]  }
   0xc   : > { %s2785_s27 = scalar_select %p2330_p4, 1, 0 }
   0xd   : > { %s2786_s28 = scalar_select %p2335_p6, 1, 0 }
   0xe   : > { %p2340_p8 = pnand %p1605_p5, %p186_p7  ;;  %s198_s7 = sshll.u32 %s2250_s30, 4  ;;  %s199_s7 = int_to_ptr.vmem [resolvable:$true] %s198_s7 }
   0xf   : > { %s2251_s9 = smov [#allocation7]   ;;  %s2081_s11 = scalar_lea.vmem %s199_s7, 1024 }
  0x10   : > { %s2787_s29 = scalar_select %p2340_p8, 1, 0 }
  0x11   : > { %p1891_p9 = pneg %p2340_p8  ;;  %s211_s10 = sshll.u32 %s2251_s9, 4  ;;  %s212_s10 = int_to_ptr.vmem [resolvable:$true] %s211_s10 }
  0x12   : > { %p2082_p13 = scmp.ne.s32.totalorder %s199_s7, %s2081_s11  ;;  %p2089_p5 = scmp.lt.s32.totalorder %s199_s7, %s199_s7 }
  0x13   : > { %p2349_p11 = pnand %p1891_p9, %p2779_p1  ;;  %p2090_p7 = scmp.lt.s32.totalorder %s2081_s11, %s2081_s11 }
  0x15   : > { %p2072_p12 = pneg %p2349_p11  ;;  %p2091_p10 = por %p2090_p7, %p2089_p5 }
  0x17   : > { %p2084_p0 = pnand %p2082_p13, %p2072_p12 }
  0x19   : > { %p2085_p3 = pneg %p2084_p0 }
  0x1b   : > { %p2092_p9 = pnand %p2091_p10, %p2085_p3 }
  0x1d   : > { %2095 = shalt.err (!%p2092_p9)
}
  0x1e   : > { %s2252_s12 = smov 128   ;;  %s2253_s13 = smov 8  }
  0x1f   : > { %1894 = dma.hbm_to_vmem [thread:$0]  (!%p2349_p11), %s2773_s1, 1024, %s199_s7, [#allocation6], %s2252_s12, %s2252_s12, %s2253_s13  }
  0x20   : > { %s2107_s16 = scalar_lea.vmem %s212_s10, 3072  ;;  %p2115_p2 = scmp.lt.s32.totalorder %s212_s10, %s212_s10 }
  0x21   : > { %p2108_p1 = scmp.ne.s32.totalorder %s212_s10, %s2107_s16  ;;  %p2116_p6 = scmp.lt.s32.totalorder %s2107_s16, %s2107_s16 }
  0x23   : > { %p2110_p13 = pnand %p2108_p1, %p2072_p12  ;;  %p2117_p5 = por %p2116_p6, %p2115_p2 }
  0x25   : > { %p2111_p0 = pneg %p2110_p13 }
  0x27   : > { %p2118_p10 = pnand %p2117_p5, %p2111_p0 }
  0x29   : > { %2121 = shalt.err (!%p2118_p10)
}
  0x2a   : > { %s2254_s17 = smov 192   ;;  %s2255_s18 = smov 12  }
  0x2b   : > { %1897 = dma.hbm_to_vmem [thread:$0]  (!%p2349_p11), %s2774_s2, 3072, %s212_s10, [#allocation6], %s2254_s17, %s2254_s17, %s2255_s18  }
  0x2c   : > { %s2256_s26 = smov [#allocation8]  }
  0x2d   : > { %s227_s30 = sshll.u32 %s2256_s26, 4  ;;  %s228_s30 = int_to_ptr.vmem [resolvable:$true] %s227_s30 }
  0x2e   : > { %s2133_s7 = scalar_lea.vmem %s228_s30, 1024  ;;  %p2141_p6 = scmp.lt.s32.totalorder %s228_s30, %s228_s30 }
  0x2f   : > { %p2134_p1 = scmp.ne.s32.totalorder %s228_s30, %s2133_s7  ;;  %p2142_p7 = scmp.lt.s32.totalorder %s2133_s7, %s2133_s7 }
  0x31   : > { %p2136_p3 = pnand %p2134_p1, %p2072_p12  ;;  %p2143_p9 = por %p2142_p7, %p2141_p6 }
  0x33   : > { %p2137_p2 = pneg %p2136_p3 }
  0x35   : > { %p2144_p13 = pnand %p2143_p9, %p2137_p2 }
  0x37   : > { %2147 = shalt.err (!%p2144_p13)
}
  0x38   : > { %s2780_s9 = smov 64   ;;  %s2781_s10 = smov 4  }
  0x39   : > { %1900 = dma.hbm_to_vmem [thread:$0]  (!%p2349_p11), %s2776_s4, 1024, %s228_s30, [#allocation9], %s2780_s9, %s2780_s9, %s2781_s10  }
  0x3a   : > { %s2383_s13 = sadd.s32 1, %s2248_s24   ;;  %s31_s15 = sadd.s32 1, %s2244_s23 }
  0x3b   : > { %s28_s14 = ssub.s32 %s2248_s24, %s2383_s13  ;;  %p38_p0 = scmp.ne.s32.totalorder %s2244_s23, %s2240_s22 }
  0x3c   : > { %p29_p12 = scmp.eq.s32.totalorder %s28_s14, 0  ;;  %p39_p5 = scmp.eq.s32.totalorder %s2248_s24, 0 }
  0x3d   : > { %p1912_p10 = scmp.lt.s32.totalorder %s2248_s24, 2  ;;  %p2789_p3 = scmp.eq.s32.totalorder %s2321_s25, 1 }
  0x3e   : > { %s2393_s16 = scalar_select %p29_p12, %s2244_s23, %s31_s15  }
  0x3f   : > { %p40_p1 = por %p39_p5, %p38_p0  ;;  %p2397_p2 = por %p2789_p3, %p38_p0 }
  0x40   : > { %s244_s17 = sand.u32 1, %s2244_s23   ;;  %s1685_s18 = sshll.u32 %s2248_s24, 9 }
  0x41   : > { %s2790_s8 = scalar_select %p2397_p2, 1, 0 }
  0x42   : > { %s1610_s19 = sshll.u32 %s244_s17, 5  ;;  %s2406_s30 = scalar_lea.hbm %s2772_s0, %s1685_s18 }
  0x43   : > { %s248_s7 = scalar_lea.vmem [#allocation2], %s1610_s19  ;;  %p2408_p11 = pnand %p1912_p10, %p40_p1 }
  0x44   : > { %s255_s11 = sshll.u32 %s248_s7, 4  ;;  %s2414_s14 = scalar_lea.sflag [#allocation3], %s244_s17  ;;  %s2412_s11 = int_to_ptr.vmem [resolvable:$true] %s255_s11 }
  0x45   : > { %s2148_s15 = scalar_lea.hbm %s2406_s30, 512  ;;  %p2150_p7 = pneg %p2408_p11 }
  0x46   : > { %p2149_p6 = scmp.ne.s32.totalorder %s2406_s30, %s2148_s15  ;;  %s2153_s19 = scalar_lea.hbm %s2772_s0, 1024 }
  0x47   : > { %p2154_p12 = scmp.lt.s32.totalorder %s2406_s30, %s2772_s0  ;;  %p2155_p0 = scmp.lt.s32.totalorder %s2153_s19, %s2148_s15 }
  0x48   : > { %p2151_p9 = pnand %p2150_p7, %p2149_p6 }
  0x49   : > { %p2156_p5 = por %p2155_p0, %p2154_p12 }
  0x4a   : > { %p2152_p13 = pneg %p2151_p9 }
  0x4c   : > { %p2157_p10 = pnand %p2156_p5, %p2152_p13 }
  0x4e   : > { %2160 = shalt.err (!%p2157_p10)
}
  0x4f   : > { %s2161_s17 = scalar_lea.vmem %s2412_s11, 512  ;;  %s2259_s9 = smov [#allocation2]  }
  0x50   : > { %p2162_p1 = scmp.ne.s32.totalorder %s2412_s11, %s2161_s17  ;;  %s2166_s10 = sshll.u32 %s2259_s9, 4  ;;  %s2167_s10 = int_to_ptr.vmem [resolvable:$false] %s2166_s10 }
  0x51   : > { %s2168_s18 = scalar_lea.vmem %s2167_s10, 1024  ;;  %p2169_p9 = scmp.lt.s32.totalorder %s2412_s11, %s2167_s10 }
  0x52   : > { %p2164_p3 = pnand %p2162_p1, %p2150_p7  ;;  %p2170_p2 = scmp.lt.s32.totalorder %s2168_s18, %s2161_s17 }
  0x54   : > { %p2165_p6 = pneg %p2164_p3  ;;  %p2171_p4 = por %p2170_p2, %p2169_p9 }
  0x56   : > { %p2172_p8 = pnand %p2171_p4, %p2165_p6 }
  0x58   : > { %2175 = shalt.err (!%p2172_p8)
}
  0x59   : > { %s2792_s15 = smov 4   ;;  %s2793_s20 = smov 64  }
  0x5a   : > { %1904 = dma.hbm_to_vmem [thread:$0]  (!%p2408_p11), %s2406_s30, 512, %s2412_s11, %s2414_s14, %s2793_s20, %s2793_s20, %s2792_s15  }
  0x5b   : > { %p2794_p7 = scmp.ne.s32.totalorder %s2787_s29, 0 }
  0x5c   : > { %s2441_s9 = sand.u32 (!%p2794_p7), 1, %s2240_s22   ;;  %p2795_p4 = scmp.ne.s32.totalorder (!%p2794_p7), %s2785_s27, 0 }
  0x5d   : > { %267 = sbr.rel (%p2794_p7) target bundleno = 1989 (0x7c5), region = 44  ;;  %s1614_s10 = sshll.u32 (!%p2794_p7), %s2441_s9, 5 }
  0x5e   : > { %s270_s19 = scalar_lea.sflag (!%p2794_p7), [#allocation3], %s2441_s9  ;;  %s2445_s26 = scalar_lea.vmem (!%p2794_p7), [#allocation2], %s1614_s10 }
  0x62   : > { %2219 = dma.done.wait (%p2795_p4), %s270_s19, 512  }
  0x63   : > { %2221 = vsyncadd (%p2795_p4), %s270_s19, 4294966784  ;;  %p2796_p8 = scmp.eq.s32.totalorder %s2321_s25, 0 }
  0x65   : > { %2223 = dma.done.wait (%p2796_p8), [#allocation6], 4096   ;;  %p2797_p2 = pmov %p2796_p8 }
  0x67   : > { %2225 = vsyncadd (%p2797_p2), [#allocation6], 4294963200  ;;  %p2798_p11 = pmov %p2797_p2 }
  0x68   : > { %p2799_p13 = pmov %p2797_p2 }
  0x69   : > { %2227 = dma.done.wait (%p2798_p11), [#allocation9], 1024  }
  0x6a   : > { %2229 = vsyncadd (%p2799_p13), [#allocation9], 4294966272  ;;  %v2260_v0 = vmov 0   ;;  %v1962_v1 = vld [vmem:[#allocation7 + $0xac] ss:$12 sps:$4 sm:$0xff]   ;;  %v1986_v9 = vld [vmem:[%s2445_s26] sm:$0xff]   ;;  %v357_v21 = vlaneseq }
  0x6b   : > { %556 = vmatprep.mubr.bf16.mxu0 %v2260_v0  ;;  %v1964_v2 = vld [vmem:[#allocation7 + $0xa8] ss:$12 sps:$4 sm:$0xff]   ;;  %524 = vmatprep.subr.bf16.mxu0 %v1962_v1  ;;  %v1967_v4 = vld [vmem:[#allocation7 + $0x90] ss:$12 sps:$4 sm:$0xff]   ;;  %v1970_v6 = vld [vmem:[#allocation7 + $0x78] ss:$12 sps:$4 sm:$0xff]  }
  0x6c   : > { %v1965_v3 = vld [vmem:[#allocation7 + $0x94] ss:$12 sps:$4 sm:$0xff]   ;;  %525 = vmatpush1.bf16.msra.mxu0 %v1964_v2  ;;  %v1968_v5 = vld [vmem:[#allocation7 + $0x7c] ss:$12 sps:$4 sm:$0xff]   ;;  %v1971_v7 = vld [vmem:[#allocation7 + $0x64] ss:$12 sps:$4 sm:$0xff]   ;;  %1763 = vmatprep.mubr.bf16.mxu1 %v1986_v9 }
  0x6d   : > { %526 = vmatprep.subr.bf16.mxu0 %v1965_v3  ;;  %v1973_v8 = vld [vmem:[#allocation7 + $0x60] ss:$12 sps:$4 sm:$0xff]   ;;  %v1976_v11 = vld [vmem:[#allocation7 + $0x48] ss:$12 sps:$4 sm:$0xff]   ;;  %v1979_v13 = vld [vmem:[#allocation7 + $0x30] ss:$12 sps:$4 sm:$0xff]  }
  0x6e   : > { %v1974_v10 = vld [vmem:[#allocation7 + $0x4c] ss:$12 sps:$4 sm:$0xff]   ;;  %v1977_v12 = vld [vmem:[#allocation7 + $0x34] ss:$12 sps:$4 sm:$0xff]   ;;  %v1980_v14 = vld [vmem:[#allocation7 + $0x1c] ss:$12 sps:$4 sm:$0xff]  }
  0x6f   : > { %v1982_v15 = vld [vmem:[#allocation7 + $0x18] ss:$12 sps:$4 sm:$0xff]   ;;  %v1985_v17 = vld [vmem:[#allocation7] ss:$12 sps:$4 sm:$0xff]   ;;  %v2465_v19 = vld [vmem:[%s2445_s26 + $0x10] sm:$0xff]   ;;  %v2472_v22 = vshrl.u32 %v357_v21, 7 }
  0x70   : > { %527 = vmatpush1.bf16.msra.mxu0 %v1967_v4  ;;  %v1983_v16 = vld [vmem:[#allocation7 + $0x4] ss:$12 sps:$4 sm:$0xff]   ;;  %v2461_v18 = vld [vmem:[%s2445_s26 + $0x8] sm:$0xff]   ;;  %v2469_v20 = vld [vmem:[%s2445_s26 + $0x18] sm:$0xff]   ;;  %vm682_vm0 = vcmask 523264   ;;  %s2261_s30 = smov 64  }
  0x71   : > { %528 = vmatprep.subr.bf16.mxu0 %v1968_v5  ;;  %v359_v23 = vsub.s32 0, %v2472_v22  ;;  %v2478_v24 = vld [vmem:[%s2775_s3] sm:$0x7]  ;;  %v363_v42 = vsub.s32 1, %v2472_v22  ;;  %s1618_s11 = sshll.u32 %s2441_s9, 6  ;;  %s1686_s18 = sshll.u32 %s2321_s25, 10 }
  0x72   : > { %v2528_v21 = vld [vmem:[#allocation5] sm:$0xff]  ;;  %s2712_s7 = scalar_lea.vmem [#allocation10], %s1618_s11  ;;  %s2727_s10 = scalar_lea.hbm %s2778_s6, %s1686_s18 }
  0x73   : > { %v360_v26 = vrot.slane %v2478_v24, %v359_v23  ;;  %v364_v45 = vrot.slane %v2478_v24, %v363_v42  ;;  %s1502_s17 = sshll.u32 %s2712_s7, 4  ;;  %s1489_s19 = scalar_lea.sflag [#allocation4], %s2441_s9  ;;  %s2721_s17 = int_to_ptr.vmem [resolvable:$true] %s1502_s17 }
  0x74   : > { %529 = vmatpush1.bf16.msra.mxu0 %v1970_v6  ;;  %s2176_s25 = scalar_lea.vmem %s2721_s17, 1024  ;;  %p2800_p0 = scmp.ne.s32.totalorder %s2790_s8, 0 }
  0x75   : > { %530 = vmatprep.subr.bf16.mxu0 %v1971_v7  ;;  %p2177_p12 = scmp.ne.s32.totalorder %s2721_s17, %s2176_s25  ;;  %s2262_s26 = smov [#allocation10]  }
  0x76   : > { %s2180_s27 = sshll.u32 %s2262_s26, 4  ;;  %s2181_s27 = int_to_ptr.vmem [resolvable:$false] %s2180_s27 }
  0x77   : > { %p2178_p5 = pnand %p2177_p12, %p2800_p0  ;;  %s2182_s29 = scalar_lea.vmem %s2181_s27, 2048 }
  0x78   : > { %531 = vmatpush1.bf16.msra.mxu0 %v1973_v8  ;;  %v1990_v8 = vld [vmem:[#allocation7 + $0xb0] ss:$12 sps:$4 sm:$0xff]   ;;  %p2183_p1 = scmp.lt.s32.totalorder %s2721_s17, %s2181_s27  ;;  %p2184_p3 = scmp.lt.s32.totalorder %s2182_s29, %s2176_s25 }
  0x79   : > { %532 = vmatprep.subr.bf16.mxu0 %v1974_v10  ;;  %1747 = vmatprep.subr.bf16.mxu1 %v1990_v8  ;;  %v1992_v10 = vld [vmem:[#allocation7 + $0x80] ss:$12 sps:$4 sm:$0xff]   ;;  %p2179_p10 = pneg %p2178_p5 }
  0x7a   : > { %1748 = vmatpush3.bf16.msra.mxu1 %v1990_v8  ;;  %p2185_p6 = por %p2184_p3, %p2183_p1 }
  0x7c   : > { %533 = vmatpush1.bf16.msra.mxu0 %v1976_v11  ;;  %v1993_v11 = vld [vmem:[#allocation7 + $0x68] ss:$12 sps:$4 sm:$0xff]   ;;  %p2186_p9 = pnand %p2185_p6, %p2179_p10 }
  0x7d   : > { %534 = vmatprep.subr.bf16.mxu0 %v1977_v12  ;;  %v1994_v12 = vld [vmem:[#allocation7 + $0x50] ss:$12 sps:$4 sm:$0xff]  }
  0x80   : > { %535 = vmatpush1.bf16.msra.mxu0 %v1979_v13  ;;  %v1995_v13 = vld [vmem:[#allocation7 + $0x38] ss:$12 sps:$4 sm:$0xff]  }
  0x81   : > { %536 = vmatprep.subr.bf16.mxu0 %v1980_v14  ;;  %v1996_v14 = vld [vmem:[#allocation7 + $0x20] ss:$12 sps:$4 sm:$0xff]  }
  0x84   : > { %537 = vmatpush1.bf16.msra.mxu0 %v1982_v15  ;;  %v1997_v15 = vld [vmem:[#allocation7 + $0x8] ss:$12 sps:$4 sm:$0xff]  }
  0x85   : > { %538 = vmatprep.subr.bf16.mxu0 %v1983_v16  ;;  %v2526_v16 = vld [vmem:[#allocation5 + $0x10] sm:$0xff] }
  0x88   : > { %539 = vmatpush1.bf16.msra.mxu0 %v1985_v17 }
  0x8b   : > { %557 = vmatmul.mubr.bf16.vlgmr.msra.gmra.mxu0 %v1986_v9  ;;  %v1991_v9 = vld [vmem:[#allocation7 + $0x98] ss:$12 sps:$4 sm:$0xff]  }
  0x8c   : > { %566 = vmatprep.mubr.bf16.mxu0 %v2260_v0  ;;  %1749 = vmatprep.subr.bf16.mxu1 %v1991_v9 }
  0x8d   : > { %1750 = vmatpush3.bf16.msra.mxu1 %v1991_v9 }
  0x8e   : > { %1751 = vmatprep.subr.bf16.mxu1 %v1992_v10 }
  0x91   : > { %1752 = vmatpush3.bf16.msra.mxu1 %v1992_v10 }
  0x92   : > { %1753 = vmatprep.subr.bf16.mxu1 %v1993_v11 }
  0x93   : > { %567 = vmatmul.mubr.bf16.gmra.mxu0 %v2461_v18 }
  0x94   : > { %576 = vmatprep.mubr.bf16.mxu0 %v2260_v0 }
  0x95   : > { %1754 = vmatpush3.bf16.msra.mxu1 %v1993_v11 }
  0x96   : > { %1755 = vmatprep.subr.bf16.mxu1 %v1994_v12 }
  0x99   : > { %1756 = vmatpush3.bf16.msra.mxu1 %v1994_v12 }
  0x9a   : > { %1757 = vmatprep.subr.bf16.mxu1 %v1995_v13 }
  0x9b   : > { %577 = vmatmul.mubr.bf16.gmra.mxu0 %v2465_v19 }
  0x9c   : > { %586 = vmatprep.mubr.bf16.mxu0 %v2260_v0 }
  0x9d   : > { %1758 = vmatpush3.bf16.msra.mxu1 %v1995_v13 }
  0x9e   : > { %1759 = vmatprep.subr.bf16.mxu1 %v1996_v14 }
  0xa1   : > { %1760 = vmatpush3.bf16.msra.mxu1 %v1996_v14 }
  0xa2   : > { %1761 = vmatprep.subr.bf16.mxu1 %v1997_v15 }
  0xa3   : > { %587 = vmatmul.mubr.bf16.gmra.mxu0 %v2469_v20 }
  0xa5   : > { %1762 = vmatpush3.bf16.msra.mxu1 %v1997_v15 }
  0xa8   : > { %1764 = vmatmul.mubr.bf16.vlgmr.msra.gmra.mxu1 %v2461_v18 }
  0xa9   : > { %1767 = vmatprep.mubr.bf16.mxu1 %v2465_v19 }
  0xb0   : > { %1768 = vmatmul.mubr.bf16.gmra.mxu1 %v2469_v20 }
 0x14b   : > { %v558_v25 = vpop.f32.mrf.mxu0 }
 0x14c   : > { %v559_v29 = vadd.f32 %v558_v25, %v360_v26 }
 0x14d   : > { %v560_v27 = vpop.f32.mrf.mxu0 }
 0x14e   : > { %v561_v59 = vadd.f32 %v560_v27, %v364_v45 }
 0x14f   : > { %v562_v28 = vpop.f32.mrf.mxu0 }
 0x150   : > { %v563_v30 = vadd.f32 %v562_v28, %v360_v26 }
 0x151   : > { %v564_v31 = vpop.f32.mrf.mxu0 }
 0x152   : > { %v2481_v32 = vpack.c.bf16 %v563_v30, %v559_v29  ;;  %v565_v58 = vadd.f32 %v564_v31, %v364_v45  ;;  %v2535_v29 = vld [vmem:[#allocation5 + $0x8] sm:$0xff] }
 0x153   : > { %v568_v33 = vpop.f32.mrf.mxu0 }
 0x154   : > { %1779 = vmatprep.mubr.msk.bf16.mxu0 %vm682_vm0, %v2481_v32  ;;  %v2503_v60 = vpack.c.bf16 %v565_v58, %v561_v59  ;;  %v569_v1 = vadd.f32 %v568_v33, %v360_v26 }
 0x155   : > { %v570_v34 = vpop.f32.mrf.mxu0 }
 0x156   : > { %v571_v55 = vadd.f32 %v570_v34, %v364_v45  ;;  %v696_v62 = vsel %vm682_vm0, %v2503_v60, 0 }
 0x157   : > { %v572_v35 = vpop.f32.mrf.mxu0 }
 0x158   : > { %v573_v63 = vadd.f32 %v572_v35, %v360_v26  ;;  %v2541_v35 = vld [vmem:[#allocation5 + $0x20] sm:$0xff] }
 0x159   : > { %v574_v36 = vpop.f32.mrf.mxu0 }
 0x15a   : > { %v575_v54 = vadd.f32 %v574_v36, %v364_v45  ;;  %v2511_v3 = vpack.c.bf16 %v573_v63, %v569_v1 }
 0x15b   : > { %v578_v37 = vpop.f32.mrf.mxu0 }
 0x15c   : > { %v2497_v56 = vpack.c.bf16 %v575_v54, %v571_v55  ;;  %v579_v2 = vadd.f32 %v578_v37, %v360_v26  ;;  %v2544_v37 = vld [vmem:[#allocation5 + $0x30] sm:$0xff] }
 0x15d   : > { %v580_v38 = vpop.f32.mrf.mxu0 }
 0x15e   : > { %v581_v50 = vadd.f32 %v580_v38, %v364_v45  ;;  %v699_v61 = vsel %vm682_vm0, %v2497_v56, 0 }
 0x15f   : > { %v582_v39 = vpop.f32.mrf.mxu0 }
 0x160   : > { %v583_v0 = vadd.f32 %v582_v39, %v360_v26 }
 0x161   : > { %v584_v40 = vpop.f32.mrf.mxu0 }
 0x162   : > { %v585_v47 = vadd.f32 %v584_v40, %v364_v45  ;;  %v2513_v4 = vpack.c.bf16 %v583_v0, %v579_v2 }
 0x163   : > { %v588_v41 = vpop.f32.mrf.mxu0 }
 0x164   : > { %v2489_v52 = vpack.c.bf16 %v585_v47, %v581_v50  ;;  %v589_v6 = vadd.f32 %v588_v41, %v360_v26  ;;  %v2547_v41 = vld [vmem:[#allocation5 + $0x28] sm:$0xff] }
 0x165   : > { %v590_v43 = vpop.f32.mrf.mxu0 }
 0x166   : > { %v591_v48 = vadd.f32 %v590_v43, %v364_v45  ;;  %v702_v57 = vsel %vm682_vm0, %v2489_v52, 0 }
 0x167   : > { %v592_v44 = vpop.f32.mrf.mxu0 }
 0x168   : > { %v593_v5 = vadd.f32 %v592_v44, %v360_v26  ;;  %v2531_v26 = vld [vmem:[#allocation5 + $0x18] sm:$0xff] }
 0x169   : > { %v594_v46 = vpop.f32.mrf.mxu0  ;;  %v2551_v44 = vld [vmem:[#allocation5 + $0x38] sm:$0xff] }
 0x16a   : > { %v595_v49 = vadd.f32 %v594_v46, %v364_v45  ;;  %v2519_v7 = vpack.c.bf16 %v593_v5, %v589_v6  ;;  %v1765_v6 = vpop.f32.mrf.mxu1 }
 0x16c   : > { %v2487_v51 = vpack.c.bf16 %v595_v49, %v591_v48  ;;  %v631_v11 = vpop.f32.mrf.mxu1 }
 0x16e   : > { %1867 = vmatprep.subr.msk.bf16.mxu0 %vm682_vm0, %v2487_v51  ;;  %v705_v53 = vsel %vm682_vm0, %v2487_v51, 0 }
 0x16f   : > { %1772 = vmatpush3.bf16.xpose.msra.mxu0 %v705_v53 }
 0x170   : > { %1868 = vmatprep.subr.msk.bf16.mxu0 %vm682_vm0, %v2489_v52 }
 0x177   : > { %1774 = vmatpush3.bf16.xpose.msra.mxu0 %v702_v57 }
 0x178   : > { %1869 = vmatprep.subr.msk.bf16.mxu0 %vm682_vm0, %v2497_v56 }
 0x17f   : > { %1776 = vmatpush3.bf16.xpose.msra.mxu0 %v699_v61 }
 0x180   : > { %1870 = vmatprep.subr.msk.bf16.mxu0 %vm682_vm0, %v2503_v60 }
 0x187   : > { %1778 = vmatpush3.bf16.xpose.msra.mxu0 %v696_v62 }
 0x18e   : > { %1780 = vmatmul.mubr.msk.bf16.vlgmr.msra.gmra.mxu0 %vm682_vm0, %v2511_v3 }
 0x18f   : > { %1783 = vmatprep.mubr.msk.bf16.mxu0 %vm682_vm0, %v2513_v4 }
 0x196   : > { %1784 = vmatmul.mubr.msk.bf16.gmra.mxu0 %vm682_vm0, %v2519_v7 }
 0x24e   : > { %v1781_v17 = vpop.f32.mrf.mxu0 }
 0x24f   : > { %v750_v23 = vadd.f32 %v1781_v17, %v2526_v16 }
 0x250   : > { %v741_v25 = vpop.f32.mrf.mxu0 }
 0x251   : > { %v742_v27 = vadd.f32 %v741_v25, %v2528_v21  ;;  %v778_v28 = vsel %vm682_vm0, %v750_v23, -inf }
 0x252   : > { %779 = vmax.xlane.f32.xlu1 %v778_v28  ;;  %v1782_v18 = vpop.f32.mrf.mxu0 }
 0x253   : > { %v753_v19 = vadd.f32 %v1782_v18, %v2531_v26  ;;  %v772_v20 = vsel %vm682_vm0, %v742_v27, -inf }
 0x254   : > { %v744_v30 = vpop.f32.mrf.mxu0  ;;  %773 = vmax.xlane.f32.xlu0 %v772_v20  ;;  %v367_v20 = vsub.s32 2, %v2472_v22 }
 0x255   : > { %v745_v31 = vadd.f32 %v744_v30, %v2535_v29  ;;  %v781_v33 = vsel %vm682_vm0, %v753_v19, -inf }
 0x256   : > { %782 = vmax.xlane.f32.xlu1 %v781_v33  ;;  %v1785_v34 = vpop.f32.mrf.mxu0  ;;  %v368_v33 = vrot.slane %v2478_v24, %v367_v20 }
 0x257   : > { %v775_v36 = vsel %vm682_vm0, %v745_v31, -inf  ;;  %v766_v42 = vadd.f32 %v1785_v34, %v2544_v37 }
 0x258   : > { %v757_v38 = vpop.f32.mrf.mxu0  ;;  %776 = vmax.xlane.f32.xlu0 %v775_v36  ;;  %v640_v22 = vadd.f32 %v1765_v6, %v368_v33 }
 0x259   : > { %v758_v39 = vadd.f32 %v757_v38, %v2541_v35  ;;  %v790_v49 = vsel %vm682_vm0, %v766_v42, -inf }
 0x25a   : > { %v1786_v40 = vpop.f32.mrf.mxu0 }
 0x25b   : > { %v784_v43 = vsel %vm682_vm0, %v758_v39, -inf  ;;  %v2557_v47 = vadd.f32 %v1786_v40, %v2551_v44 }
 0x25c   : > { %v760_v45 = vpop.f32.mrf.mxu0  ;;  %785 = vmax.xlane.f32.xlu0 %v784_v43 }
 0x25d   : > { %v2554_v46 = vadd.f32 %v760_v45, %v2547_v41  ;;  %v793_v50 = vsel %vm682_vm0, %v2557_v47, -inf }
 0x25f   : > { %v787_v48 = vsel %vm682_vm0, %v2554_v46, -inf }
 0x260   : > { %788 = vmax.xlane.f32.xlu1 %v787_v48  ;;  %791 = vmax.xlane.f32.xlu0 %v790_v49 }
 0x264   : > { %794 = vmax.xlane.f32.xlu1 %v793_v50 }
 0x2db   : > { %v780_v53 = vpop.xlane.xlu1 %779 }
 0x2dc   : > { %v798_v54 = vsub.f32 %v750_v23, %v780_v53  ;;  %v1766_v23 = vpop.f32.mrf.mxu1 }
 0x2dd   : > { %v774_v55 = vpop.xlane.xlu0 %773  ;;  %v643_v45 = vadd.f32 %v1766_v23, %v368_v33 }
 0x2de   : > { %v808_v57 = vmul.f32 1.442695, %v798_v54  ;;  %v796_v58 = vsub.f32 %v742_v27, %v774_v55  ;;  %v632_v54 = vadd.f32 %v631_v11, %v368_v33 }
 0x2df   : > { %v783_v59 = vpop.xlane.xlu1 %782  ;;  %v2594_v55 = vpack.c.bf16 %v643_v45, %v640_v22 }
 0x2e0   : > { %2006 = vpow2.f32 %v808_v57  ;;  %v804_v61 = vmul.f32 1.442695, %v796_v58  ;;  %v799_v62 = vsub.f32 %v753_v19, %v783_v59  ;;  %v634_v19 = vpop.f32.mrf.mxu1 }
 0x2e1   : > { %v777_v63 = vpop.xlane.xlu0 %776  ;;  %v635_v57 = vadd.f32 %v634_v19, %v368_v33 }
 0x2e2   : > { %2008 = vpow2.f32 %v804_v61  ;;  %v810_v0 = vmul.f32 1.442695, %v799_v62  ;;  %v797_v1 = vsub.f32 %v745_v31, %v777_v63  ;;  %v1769_v31 = vpop.f32.mrf.mxu1 }
 0x2e3   : > { %v656_v38 = vadd.f32 %v1769_v31, %v368_v33  ;;  %v2602_v59 = vpack.c.bf16 %v635_v57, %v632_v54  ;;  %v1999_v54 = vld [vmem:[#allocation8 + $0x10] sm:$0xff]  }
 0x2e4   : > { %2010 = vpow2.f32 %v810_v0  ;;  %v806_v2 = vmul.f32 1.442695, %v797_v1  ;;  %v647_v34 = vpop.f32.mrf.mxu1 }
 0x2e5   : > { %v786_v5 = vpop.xlane.xlu0 %785  ;;  %v648_v50 = vadd.f32 %v647_v34, %v368_v33 }
 0x2e6   : > { %2012 = vpow2.f32 %v806_v2  ;;  %v800_v8 = vsub.f32 %v758_v39, %v786_v5  ;;  %v1770_v40 = vpop.f32.mrf.mxu1 }
 0x2e7   : > { %v659_v43 = vadd.f32 %v1770_v40, %v368_v33 }
 0x2e8   : > { %v812_v14 = vmul.f32 1.442695, %v800_v8  ;;  %v650_v24 = vpop.f32.mrf.mxu1 }
 0x2e9   : > { %v792_v9 = vpop.xlane.xlu0 %791  ;;  %v2588_v48 = vpack.c.bf16 %v659_v43, %v656_v38  ;;  %v651_v53 = vadd.f32 %v650_v24, %v368_v33  ;;  %v789_v61 = vpop.xlane.xlu1 %788 }
 0x2ea   : > { %v802_v10 = vsub.f32 %v766_v42, %v792_v9 }
 0x2eb   : > { %1787 = vmatprep.subr.bf16.mxu1 %v2588_v48  ;;  %v2596_v58 = vpack.c.bf16 %v651_v53, %v648_v50 }
 0x2ec   : > { %v816_v12 = vmul.f32 1.442695, %v802_v10  ;;  %1788 = vmatpush3.bf16.msra.mxu1 %v2588_v48 }
 0x2ed   : > { %v2564_v13 = vpop.eup %2006  ;;  %1789 = vmatprep.subr.bf16.mxu1 %v2596_v58  ;;  %v795_v62 = vpop.xlane.xlu1 %794 }
 0x2ee   : > { %v826_v15 = vsel %vm682_vm0, %v2564_v13, 0.0  ;;  %2014 = vpow2.f32 %v816_v12  ;;  %v803_v63 = vsub.f32 %v2557_v47, %v795_v62 }
 0x2ef   : > { %v2568_v17 = vpop.eup %2008  ;;  %827 = vadd.xlane.f32.xlu0 %v826_v15  ;;  %2016 = vpow2.f32 %v812_v14 }
 0x2f0   : > { %v820_v28 = vsel %vm682_vm0, %v2568_v17, 0.0  ;;  %1790 = vmatpush3.bf16.msra.mxu1 %v2596_v58  ;;  %v818_v0 = vmul.f32 1.442695, %v803_v63 }
 0x2f1   : > { %v2570_v25 = vpop.eup %2010  ;;  %1791 = vmatprep.subr.bf16.mxu1 %v2594_v55 }
 0x2f2   : > { %v829_v27 = vsel %vm682_vm0, %v2570_v25, 0.0  ;;  %2018 = vpow2.f32 %v818_v0 }
 0x2f3   : > { %v2576_v18 = vpop.eup %2012  ;;  %830 = vadd.xlane.f32.xlu1 %v829_v27  ;;  %821 = vadd.xlane.f32.xlu0 %v820_v28 }
 0x2f4   : > { %v823_v30 = vsel %vm682_vm0, %v2576_v18, 0.0  ;;  %1792 = vmatpush3.bf16.msra.mxu1 %v2594_v55 }
 0x2f5   : > { %1793 = vmatprep.subr.bf16.mxu1 %v2602_v59 }
 0x2f7   : > { %824 = vadd.xlane.f32.xlu1 %v823_v30  ;;  %v1998_v30 = vld [vmem:[#allocation8 + $0x18] sm:$0xff]  }
 0x2f8   : > { %1794 = vmatpush3.bf16.msra.mxu1 %v2602_v59 }
 0x2fb   : > { %v2582_v36 = vpop.eup %2014 }
 0x2fc   : > { %v838_v39 = vsel %vm682_vm0, %v2582_v36, 0.0  ;;  %v2586_v42 = vpop.eup %2016 }
 0x2fd   : > { %839 = vadd.xlane.f32.xlu0 %v838_v39  ;;  %v832_v49 = vsel %vm682_vm0, %v2586_v42, 0.0 }
 0x301   : > { %833 = vadd.xlane.f32.xlu0 %v832_v49 }
 0x308   : > { %973 = vrot.lane.b32.xlu1 %v2489_v52, %s2261_s30  ;;  %v801_v52 = vsub.f32 %v2554_v46, %v789_v61 }
 0x30a   : > { %v814_v1 = vmul.f32 1.442695, %v801_v52 }
 0x30c   : > { %971 = vrot.lane.b32.xlu1 %v2497_v56, %s2261_s30  ;;  %2020 = vpow2.f32 %v814_v1  ;;  %v2019_v56 = vpop.eup %2018 }
 0x30d   : > { %v841_v2 = vsel %vm682_vm0, %v2019_v56, 0.0 }
 0x317   : > { %975 = vrot.lane.b32.xlu0 %v2487_v51, %s2261_s30 }
 0x319   : > { %v2021_v5 = vpop.eup %2020 }
 0x31a   : > { %v835_v47 = vsel %vm682_vm0, %v2021_v5, 0.0 }
 0x31b   : > { %957 = vrot.lane.b32.xlu0 %v2481_v32, %s2261_s30 }
 0x31f   : > { %961 = vrot.lane.b32.xlu0 %v2513_v4, %s2261_s30 }
 0x330   : > { %842 = vadd.xlane.f32.xlu1 %v841_v2 }
 0x334   : > { %836 = vadd.xlane.f32.xlu1 %v835_v47 }
 0x345   : > { %969 = vrot.lane.b32.xlu1 %v2503_v60, %s2261_s30 }
 0x349   : > { %959 = vrot.lane.b32.xlu1 %v2511_v3, %s2261_s30 }
 0x34d   : > { %963 = vrot.lane.b32.xlu1 %v2519_v7, %s2261_s30 }
 0x378   : > { %v828_v32 = vpop.xlane.xlu0 %827 }
 0x37c   : > { %v831_v51 = vpop.xlane.xlu1 %830  ;;  %v822_v4 = vpop.xlane.xlu0 %821 }
 0x37d   : > { %2022 = vrcp.f32 %v831_v51 }
 0x37e   : > { %2024 = vrcp.f32 %v822_v4 }
 0x37f   : > { %2026 = vrcp.f32 %v828_v32 }
 0x380   : > { %v825_v46 = vpop.xlane.xlu1 %824 }
 0x381   : > { %2028 = vrcp.f32 %v825_v46 }
 0x384   : > { %v974_v19 = vpop.permute.xlu1 %973 }
 0x386   : > { %v840_v6 = vpop.xlane.xlu0 %839 }
 0x38a   : > { %v2023_v8 = vpop.eup %2022  ;;  %v834_v9 = vpop.xlane.xlu0 %833 }
 0x38b   : > { %v2025_v10 = vpop.eup %2024  ;;  %v855_v12 = vmul.f32 %v2023_v8, %v2570_v25  ;;  %v972_v25 = vpop.permute.xlu1 %971 }
 0x38c   : > { %v2027_v11 = vpop.eup %2026  ;;  %v852_v14 = vmul.f32 %v2025_v10, %v2568_v17  ;;  %v996_v17 = vsel %vm682_vm0, %v974_v19, 0 }
 0x38d   : > { %v854_v15 = vmul.f32 %v2027_v11, %v2564_v13  ;;  %v993_v13 = vsel %vm682_vm0, %v972_v25, 0 }
 0x38e   : > { %v2029_v60 = vpop.eup %2028  ;;  %v976_v3 = vpop.permute.xlu0 %975 }
 0x38f   : > { %v853_v7 = vmul.f32 %v2029_v60, %v2576_v18  ;;  %1871 = vmatprep.subr.msk.bf16.mxu1 %vm682_vm0, %v976_v3  ;;  %v861_v27 = vpack.c.bf16 %v855_v12, %v854_v15  ;;  %v999_v28 = vsel %vm682_vm0, %v976_v3, 0 }
 0x391   : > { %v860_v23 = vpack.c.bf16 %v853_v7, %v852_v14 }
 0x392   : > { %v958_v53 = vpop.permute.xlu0 %957 }
 0x393   : > { %1795 = vmatprep.mubr.msk.bf16.mxu1 %vm682_vm0, %v860_v23 }
 0x394   : > { %1796 = vmatmul.mubr.msk.bf16.vlgmr.msra.gmra.mxu1 %vm682_vm0, %v861_v27 }
 0x395   : > { %1804 = vmatpush3.bf16.xpose.msra.mxu1 %v999_v28 }
 0x396   : > { %1872 = vmatprep.subr.msk.bf16.mxu1 %vm682_vm0, %v974_v19  ;;  %v962_v61 = vpop.permute.xlu0 %961 }
 0x39d   : > { %1806 = vmatpush3.bf16.xpose.msra.mxu1 %v996_v17 }
 0x39e   : > { %1873 = vmatprep.subr.msk.bf16.mxu1 %vm682_vm0, %v972_v25 }
 0x3a5   : > { %1808 = vmatpush3.bf16.xpose.msra.mxu1 %v993_v13 }
 0x3b9   : > { %v843_v18 = vpop.xlane.xlu1 %842 }
 0x3ba   : > { %2030 = vrcp.f32 %v843_v18 }
 0x3bb   : > { %2032 = vrcp.f32 %v834_v9 }
 0x3bc   : > { %2034 = vrcp.f32 %v840_v6 }
 0x3bd   : > { %v837_v20 = vpop.xlane.xlu1 %836 }
 0x3be   : > { %2036 = vrcp.f32 %v837_v20 }
 0x3c1   : > { %v970_v31 = vpop.permute.xlu1 %969 }
 0x3c2   : > { %v990_v33 = vsel %vm682_vm0, %v970_v31, 0  ;;  %1874 = vmatprep.subr.msk.bf16.mxu1 %vm682_vm0, %v970_v31 }
 0x3c3   : > { %1810 = vmatpush3.bf16.xpose.msra.mxu1 %v990_v33 }
 0x3c4   : > { %1851 = vmatprep.subr.bf16.mxu1 %v1998_v30 }
 0x3c5   : > { %v960_v57 = vpop.permute.xlu1 %959 }
 0x3c7   : > { %v2031_v34 = vpop.eup %2030 }
 0x3c8   : > { %v2033_v38 = vpop.eup %2032  ;;  %v859_v43 = vmul.f32 %v2031_v34, %v2019_v56 }
 0x3c9   : > { %v2035_v39 = vpop.eup %2034  ;;  %v856_v22 = vmul.f32 %v2033_v38, %v2586_v42  ;;  %v2000_v42 = vld [vmem:[#allocation8 + $0x8] sm:$0xff]   ;;  %v964_v62 = vpop.permute.xlu1 %963 }
 0x3ca   : > { %v858_v49 = vmul.f32 %v2035_v39, %v2582_v36  ;;  %v2001_v36 = vld [vmem:[#allocation8] sm:$0xff]  }
 0x3cb   : > { %v2037_v40 = vpop.eup %2036 }
 0x3cc   : > { %v857_v45 = vmul.f32 %v2037_v40, %v2021_v5  ;;  %v863_v50 = vpack.c.bf16 %v859_v43, %v858_v49 }
 0x3ce   : > { %v862_v24 = vpack.c.bf16 %v857_v45, %v856_v22 }
 0x3d0   : > { %1799 = vmatprep.mubr.msk.bf16.mxu1 %vm682_vm0, %v862_v24 }
 0x3d1   : > { %1800 = vmatmul.mubr.msk.bf16.gmra.mxu1 %vm682_vm0, %v863_v50 }
 0x3d2   : > { %1811 = vmatprep.mubr.msk.bf16.mxu1 %vm682_vm0, %v958_v53 }
 0x3d9   : > { %1812 = vmatmul.mubr.msk.bf16.vlgmr.msra.gmra.mxu1 %vm682_vm0, %v960_v57 }
 0x3da   : > { %1815 = vmatprep.mubr.msk.bf16.mxu1 %vm682_vm0, %v962_v61  ;;  %1852 = vmatpush3.bf16.msra.mxu1 %v1998_v30 }
 0x3db   : > { %1853 = vmatprep.subr.bf16.mxu1 %v1999_v54 }
 0x3de   : > { %1854 = vmatpush3.bf16.msra.mxu1 %v1999_v54 }
 0x3df   : > { %1855 = vmatprep.subr.bf16.mxu1 %v2000_v42 }
 0x3e1   : > { %1816 = vmatmul.mubr.msk.bf16.gmra.mxu1 %vm682_vm0, %v964_v62 }
 0x3e2   : > { %1856 = vmatpush3.bf16.msra.mxu1 %v2000_v42 }
 0x3e3   : > { %1857 = vmatprep.subr.bf16.mxu1 %v2001_v36 }
 0x3e6   : > { %1858 = vmatpush3.bf16.msra.mxu1 %v2001_v36 }
 0x454   : > { %v1797_v63 = vpop.f32.mrf.mxu1 }
 0x456   : > { %v910_v52 = vpop.f32.mrf.mxu1 }
 0x458   : > { %v1798_v0 = vpop.f32.mrf.mxu1 }
 0x459   : > { %v942_v2 = vpack.c.bf16 %v1798_v0, %v1797_v63 }
 0x45a   : > { %v913_v1 = vpop.f32.mrf.mxu1 }
 0x45b   : > { %v941_v56 = vpack.c.bf16 %v913_v1, %v910_v52 }
 0x45d   : > { %1859 = vmatprep.mubr.msk.bf16.mxu1 %vm682_vm0, %v941_v56 }
 0x45e   : > { %1860 = vmatmul.mubr.msk.bf16.vlgmr.msra.gmra.mxu1 %vm682_vm0, %v942_v2 }
 0x491   : > { %v1801_v5 = vpop.f32.mrf.mxu1 }
 0x493   : > { %v926_v47 = vpop.f32.mrf.mxu1 }
 0x495   : > { %v1802_v32 = vpop.f32.mrf.mxu1 }
 0x496   : > { %v944_v46 = vpack.c.bf16 %v1802_v32, %v1801_v5 }
 0x497   : > { %v929_v51 = vpop.f32.mrf.mxu1 }
 0x498   : > { %v943_v4 = vpack.c.bf16 %v929_v51, %v926_v47 }
 0x499   : > { %v1813_v6 = vpop.f32.mrf.mxu1 }
 0x49a   : > { %1863 = vmatprep.mubr.msk.bf16.mxu1 %vm682_vm0, %v943_v4  ;;  %v1044_v11 = vadd.f32 %v1813_v6, %v2526_v16 }
 0x49b   : > { %v1035_v8 = vpop.f32.mrf.mxu1  ;;  %1864 = vmatmul.mubr.msk.bf16.gmra.mxu1 %vm682_vm0, %v944_v46 }
 0x49c   : > { %v1036_v9 = vadd.f32 %v1035_v8, %v2528_v21  ;;  %v1072_v23 = vsel %vm682_vm0, %v1044_v11, -inf }
 0x49d   : > { %v1814_v10 = vpop.f32.mrf.mxu1 }
 0x49e   : > { %v1066_v60 = vsel %vm682_vm0, %v1036_v9, -inf  ;;  %v1047_v7 = vadd.f32 %v1814_v10, %v2531_v26 }
 0x49f   : > { %v1038_v12 = vpop.f32.mrf.mxu1  ;;  %1067 = vmax.xlane.f32.xlu0 %v1066_v60 }
 0x4a0   : > { %v1039_v3 = vadd.f32 %v1038_v12, %v2535_v29  ;;  %v1075_v16 = vsel %vm682_vm0, %v1047_v7, -inf }
 0x4a1   : > { %v1817_v14 = vpop.f32.mrf.mxu1 }
 0x4a2   : > { %v1069_v15 = vsel %vm682_vm0, %v1039_v3, -inf  ;;  %v1060_v29 = vadd.f32 %v1817_v14, %v2544_v37 }
 0x4a3   : > { %1070 = vmax.xlane.f32.xlu1 %v1069_v15  ;;  %1073 = vmax.xlane.f32.xlu0 %v1072_v23  ;;  %v1051_v27 = vpop.f32.mrf.mxu1 }
 0x4a4   : > { %v1052_v28 = vadd.f32 %v1051_v27, %v2541_v35  ;;  %v1084_v35 = vsel %vm682_vm0, %v1060_v29, -inf }
 0x4a5   : > { %v1818_v21 = vpop.f32.mrf.mxu1 }
 0x4a6   : > { %v1063_v26 = vadd.f32 %v1818_v21, %v2551_v44  ;;  %v1078_v13 = vsel %vm682_vm0, %v1052_v28, -inf }
 0x4a7   : > { %1076 = vmax.xlane.f32.xlu0 %v1075_v16  ;;  %v1054_v19 = vpop.f32.mrf.mxu1 }
 0x4a8   : > { %v1055_v17 = vadd.f32 %v1054_v19, %v2547_v41  ;;  %v1087_v18 = vsel %vm682_vm0, %v1063_v26, -inf }
 0x4aa   : > { %v1081_v25 = vsel %vm682_vm0, %v1055_v17, -inf }
 0x4ab   : > { %1082 = vmax.xlane.f32.xlu1 %v1081_v25  ;;  %1079 = vmax.xlane.f32.xlu0 %v1078_v13 }
 0x4af   : > { %1088 = vmax.xlane.f32.xlu1 %v1087_v18  ;;  %1085 = vmax.xlane.f32.xlu0 %v1084_v35  ;;  %v2003_v35 = vld [vmem:[#allocation8 + $0x30] sm:$0xff]  }
 0x528   : > { %v1068_v20 = vpop.xlane.xlu0 %1067 }
 0x529   : > { %v1090_v30 = vsub.f32 %v1036_v9, %v1068_v20 }
 0x52b   : > { %v1098_v44 = vmul.f32 1.442695, %v1090_v30 }
 0x52c   : > { %v1071_v31 = vpop.xlane.xlu1 %1070  ;;  %v1074_v41 = vpop.xlane.xlu0 %1073 }
 0x52d   : > { %v1092_v33 = vsub.f32 %v1044_v11, %v1074_v41  ;;  %v1091_v37 = vsub.f32 %v1039_v3, %v1071_v31 }
 0x52f   : > { %v1102_v34 = vmul.f32 1.442695, %v1092_v33  ;;  %v1100_v40 = vmul.f32 1.442695, %v1091_v37 }
 0x530   : > { %v1077_v38 = vpop.xlane.xlu0 %1076 }
 0x531   : > { %v1093_v39 = vsub.f32 %v1047_v7, %v1077_v38  ;;  %2038 = vpow2.f32 %v1102_v34 }
 0x532   : > { %2040 = vpow2.f32 %v1098_v44 }
 0x533   : > { %v1104_v43 = vmul.f32 1.442695, %v1093_v39 }
 0x534   : > { %v1080_v22 = vpop.xlane.xlu0 %1079  ;;  %v1083_v5 = vpop.xlane.xlu1 %1082 }
 0x535   : > { %2042 = vpow2.f32 %v1104_v43  ;;  %v1094_v45 = vsub.f32 %v1052_v28, %v1080_v22  ;;  %v1095_v51 = vsub.f32 %v1055_v17, %v1083_v5  ;;  %v2005_v43 = vld [vmem:[#allocation8 + $0x20] sm:$0xff]  }
 0x536   : > { %2044 = vpow2.f32 %v1100_v40  ;;  %v2004_v40 = vld [vmem:[#allocation8 + $0x28] sm:$0xff]  }
 0x537   : > { %v1106_v53 = vmul.f32 1.442695, %v1094_v45  ;;  %v1108_v46 = vmul.f32 1.442695, %v1095_v51 }
 0x538   : > { %v1086_v49 = vpop.xlane.xlu0 %1085  ;;  %v1089_v47 = vpop.xlane.xlu1 %1088 }
 0x539   : > { %v1096_v24 = vsub.f32 %v1060_v29, %v1086_v49  ;;  %v1097_v32 = vsub.f32 %v1063_v26, %v1089_v47  ;;  %v2002_v26 = vld [vmem:[#allocation8 + $0x38] sm:$0xff]  }
 0x53b   : > { %v1110_v50 = vmul.f32 1.442695, %v1096_v24  ;;  %v1112_v4 = vmul.f32 1.442695, %v1097_v32 }
 0x53d   : > { %2046 = vpow2.f32 %v1110_v50 }
 0x53e   : > { %v2668_v54 = vpop.eup %2038  ;;  %2048 = vpow2.f32 %v1106_v53 }
 0x53f   : > { %v1120_v57 = vsel %vm682_vm0, %v2668_v54, 0.0  ;;  %v2041_v61 = vpop.eup %2040  ;;  %2050 = vpow2.f32 %v1112_v4 }
 0x540   : > { %1121 = vadd.xlane.f32.xlu0 %v1120_v57  ;;  %v1114_v63 = vsel %vm682_vm0, %v2041_v61, 0.0  ;;  %2052 = vpow2.f32 %v1108_v46 }
 0x542   : > { %v2672_v42 = vpop.eup %2042 }
 0x543   : > { %v1123_v36 = vsel %vm682_vm0, %v2672_v42, 0.0  ;;  %v2045_v62 = vpop.eup %2044 }
 0x544   : > { %1124 = vadd.xlane.f32.xlu1 %v1123_v36  ;;  %1115 = vadd.xlane.f32.xlu0 %v1114_v63  ;;  %v1117_v52 = vsel %vm682_vm0, %v2045_v62, 0.0  ;;  %v1861_v63 = vpop.f32.mrf.mxu1 }
 0x548   : > { %1118 = vadd.xlane.f32.xlu1 %v1117_v52  ;;  %v1434_v52 = vpop.f32.mrf.mxu1 }
 0x54a   : > { %v2678_v0 = vpop.eup %2046 }
 0x54b   : > { %v1132_v1 = vsel %vm682_vm0, %v2678_v0, 0.0  ;;  %v2682_v56 = vpop.eup %2048 }
 0x54c   : > { %1133 = vadd.xlane.f32.xlu0 %v1132_v1  ;;  %v1126_v2 = vsel %vm682_vm0, %v2682_v56, 0.0  ;;  %v2051_v6 = vpop.eup %2050 }
 0x54d   : > { %v1135_v8 = vsel %vm682_vm0, %v2051_v6, 0.0  ;;  %v2053_v9 = vpop.eup %2052 }
 0x550   : > { %1127 = vadd.xlane.f32.xlu0 %v1126_v2 }
 0x559   : > { %1166 = vrot.lane.b32.xlu1 %v2596_v58, %s2261_s30  ;;  %v1129_v58 = vsel %vm682_vm0, %v2053_v9, 0.0 }
 0x55d   : > { %1164 = vrot.lane.b32.xlu1 %v2594_v55, %s2261_s30 }
 0x566   : > { %1168 = vrot.lane.b32.xlu0 %v2588_v48, %s2261_s30 }
 0x581   : > { %1136 = vadd.xlane.f32.xlu1 %v1135_v8 }
 0x585   : > { %1130 = vadd.xlane.f32.xlu1 %v1129_v58 }
 0x596   : > { %1162 = vrot.lane.b32.xlu1 %v2602_v59, %s2261_s30 }
 0x5c9   : > { %v1122_v55 = vpop.xlane.xlu0 %1121 }
 0x5cd   : > { %v1125_v10 = vpop.xlane.xlu1 %1124  ;;  %v1116_v48 = vpop.xlane.xlu0 %1115 }
 0x5ce   : > { %2054 = vrcp.f32 %v1116_v48 }
 0x5d1   : > { %v1119_v11 = vpop.xlane.xlu1 %1118 }
 0x5d2   : > { %2056 = vrcp.f32 %v1119_v11 }
 0x5d3   : > { %2058 = vrcp.f32 %v1125_v10 }
 0x5d4   : > { %2060 = vrcp.f32 %v1122_v55 }
 0x5d5   : > { %v1134_v60 = vpop.xlane.xlu0 %1133  ;;  %v1167_v14 = vpop.permute.xlu1 %1166 }
 0x5d9   : > { %v1128_v12 = vpop.xlane.xlu0 %1127  ;;  %v1165_v28 = vpop.permute.xlu1 %1164 }
 0x5db   : > { %v2055_v3 = vpop.eup %2054 }
 0x5dc   : > { %v1146_v23 = vmul.f32 %v2055_v3, %v2041_v61 }
 0x5dd   : > { %v1169_v7 = vpop.permute.xlu0 %1168 }
 0x5de   : > { %1819 = vmatprep.subr.bf16.mxu0 %v1169_v7 }
 0x5df   : > { %v2057_v15 = vpop.eup %2056  ;;  %1820 = vmatpush3.bf16.msra.mxu0 %v1169_v7 }
 0x5e0   : > { %v1147_v27 = vmul.f32 %v2057_v15, %v2045_v62  ;;  %1821 = vmatprep.subr.bf16.mxu0 %v1167_v14  ;;  %v2059_v16 = vpop.eup %2058 }
 0x5e1   : > { %v2061_v17 = vpop.eup %2060  ;;  %v1149_v29 = vmul.f32 %v2059_v16, %v2672_v42 }
 0x5e2   : > { %v1154_v21 = vpack.c.bf16 %v1147_v27, %v1146_v23  ;;  %v1148_v13 = vmul.f32 %v2061_v17, %v2668_v54 }
 0x5e3   : > { %1822 = vmatpush3.bf16.msra.mxu0 %v1167_v14 }
 0x5e4   : > { %1827 = vmatprep.mubr.msk.bf16.mxu0 %vm682_vm0, %v1154_v21  ;;  %1823 = vmatprep.subr.bf16.mxu0 %v1165_v28  ;;  %v1155_v18 = vpack.c.bf16 %v1149_v29, %v1148_v13 }
 0x5e7   : > { %1824 = vmatpush3.bf16.msra.mxu0 %v1165_v28 }
 0x60a   : > { %v1137_v59 = vpop.xlane.xlu1 %1136 }
 0x60b   : > { %2062 = vrcp.f32 %v1137_v59 }
 0x60c   : > { %2064 = vrcp.f32 %v1128_v12 }
 0x60d   : > { %2066 = vrcp.f32 %v1134_v60 }
 0x60e   : > { %v1131_v19 = vpop.xlane.xlu1 %1130 }
 0x60f   : > { %2068 = vrcp.f32 %v1131_v19 }
 0x612   : > { %v1163_v25 = vpop.permute.xlu1 %1162 }
 0x613   : > { %1825 = vmatprep.subr.bf16.mxu0 %v1163_v25 }
 0x614   : > { %1826 = vmatpush3.bf16.msra.mxu0 %v1163_v25 }
 0x615   : > { %1835 = vmatprep.subr.bf16.mxu0 %v2002_v26 }
 0x617   : > { %1828 = vmatmul.mubr.msk.bf16.vlgmr.msra.gmra.mxu0 %vm682_vm0, %v1155_v18 }
 0x618   : > { %1836 = vmatpush3.bf16.msra.mxu0 %v2002_v26  ;;  %v2063_v20 = vpop.eup %2062 }
 0x619   : > { %1837 = vmatprep.subr.bf16.mxu0 %v2003_v35  ;;  %v2065_v30 = vpop.eup %2064  ;;  %v1153_v33 = vmul.f32 %v2063_v20, %v2051_v6 }
 0x61a   : > { %v2067_v31 = vpop.eup %2066  ;;  %v1150_v37 = vmul.f32 %v2065_v30, %v2682_v56  ;;  %v1679_v56 = vld [vmem:[%s2777_s5] ss:$0 sm:$0xff] }
 0x61b   : > { %v1152_v44 = vmul.f32 %v2067_v31, %v2678_v0  ;;  %v1862_v0 = vpop.f32.mrf.mxu1 }
 0x61c   : > { %v2069_v41 = vpop.eup %2068  ;;  %1838 = vmatpush3.bf16.msra.mxu0 %v2003_v35 }
 0x61d   : > { %v1151_v34 = vmul.f32 %v2069_v41, %v2053_v9  ;;  %v1157_v39 = vpack.c.bf16 %v1153_v33, %v1152_v44  ;;  %1839 = vmatprep.subr.bf16.mxu0 %v2004_v40  ;;  %v1437_v47 = vpop.f32.mrf.mxu1 }
 0x61f   : > { %v1156_v38 = vpack.c.bf16 %v1151_v34, %v1150_v37  ;;  %v1865_v46 = vpop.f32.mrf.mxu1 }
 0x620   : > { %1840 = vmatpush3.bf16.msra.mxu0 %v2004_v40 }
 0x621   : > { %1831 = vmatprep.mubr.msk.bf16.mxu0 %vm682_vm0, %v1156_v38  ;;  %1841 = vmatprep.subr.bf16.mxu0 %v2005_v43  ;;  %v1450_v10 = vpop.f32.mrf.mxu1 }
 0x622   : > { %1832 = vmatmul.mubr.msk.bf16.gmra.mxu0 %vm682_vm0, %v1157_v39 }
 0x623   : > { %v1866_v12 = vpop.f32.mrf.mxu1 }
 0x624   : > { %1842 = vmatpush3.bf16.msra.mxu0 %v2005_v43 }
 0x625   : > { %v1453_v21 = vpop.f32.mrf.mxu1 }
 0x6d7   : > { %v1829_v22 = vpop.f32.mrf.mxu0 }
 0x6d9   : > { %v1220_v45 = vpop.f32.mrf.mxu0 }
 0x6db   : > { %v1830_v49 = vpop.f32.mrf.mxu0 }
 0x6dc   : > { %v1252_v53 = vpack.c.bf16 %v1830_v49, %v1829_v22 }
 0x6dd   : > { %v1223_v24 = vpop.f32.mrf.mxu0 }
 0x6de   : > { %v1251_v50 = vpack.c.bf16 %v1223_v24, %v1220_v45 }
 0x6e0   : > { %1843 = vmatprep.mubr.msk.bf16.mxu0 %vm682_vm0, %v1251_v50 }
 0x6e1   : > { %1844 = vmatmul.mubr.msk.bf16.vlgmr.msra.gmra.mxu0 %vm682_vm0, %v1252_v53 }
 0x6e2   : > { %v1833_v54 = vpop.f32.mrf.mxu0 }
 0x6e4   : > { %v1236_v57 = vpop.f32.mrf.mxu0 }
 0x6e6   : > { %v1834_v61 = vpop.f32.mrf.mxu0 }
 0x6e7   : > { %v1254_v62 = vpack.c.bf16 %v1834_v61, %v1833_v54 }
 0x6e8   : > { %v1239_v42 = vpop.f32.mrf.mxu0 }
 0x6e9   : > { %v1253_v36 = vpack.c.bf16 %v1239_v42, %v1236_v57 }
 0x6eb   : > { %1847 = vmatprep.mubr.msk.bf16.mxu0 %vm682_vm0, %v1253_v36 }
 0x6ec   : > { %1848 = vmatmul.mubr.msk.bf16.gmra.mxu0 %vm682_vm0, %v1254_v62 }
 0x7a1   : > { %v1845_v1 = vpop.f32.mrf.mxu0 }
 0x7a2   : > { %v1443_v2 = vadd.f32 %v1861_v63, %v1845_v1 }
 0x7a3   : > { %v1333_v5 = vpop.f32.mrf.mxu0 }
 0x7a4   : > { %v1474_v32 = vadd.f32 %v1679_v56, %v1443_v2  ;;  %v1435_v51 = vadd.f32 %v1434_v52, %v1333_v5 }
 0x7a5   : > { %v1846_v4 = vpop.f32.mrf.mxu0 }
 0x7a6   : > { %1482 = vst [vmem:[%s2712_s7 + $0x10] sm:$0xff] %v1474_v32  ;;  %v1472_v6 = vadd.f32 %v1679_v56, %v1435_v51  ;;  %v1446_v8 = vadd.f32 %v1862_v0, %v1846_v4 }
 0x7a7   : > { %v1336_v9 = vpop.f32.mrf.mxu0 }
 0x7a8   : > { %1480 = vst [vmem:[%s2712_s7] sm:$0xff] %v1472_v6  ;;  %v1475_v58 = vadd.f32 %v1679_v56, %v1446_v8  ;;  %v1438_v55 = vadd.f32 %v1437_v47, %v1336_v9 }
 0x7aa   : > { %1483 = vst [vmem:[%s2712_s7 + $0x18] sm:$0xff] %v1475_v58  ;;  %v1473_v48 = vadd.f32 %v1679_v56, %v1438_v55 }
 0x7ac   : > { %1481 = vst [vmem:[%s2712_s7 + $0x8] sm:$0xff] %v1473_v48  ;;  %v1849_v11 = vpop.f32.mrf.mxu0 }
 0x7ad   : > { %v1459_v60 = vadd.f32 %v1865_v46, %v1849_v11 }
 0x7ae   : > { %v1349_v3 = vpop.f32.mrf.mxu0 }
 0x7af   : > { %v1478_v14 = vadd.f32 %v1679_v56, %v1459_v60  ;;  %v1451_v7 = vadd.f32 %v1450_v10, %v1349_v3 }
 0x7b0   : > { %v1850_v15 = vpop.f32.mrf.mxu0 }
 0x7b1   : > { %1486 = vst [vmem:[%s2712_s7 + $0x30] sm:$0xff] %v1478_v14  ;;  %v1476_v23 = vadd.f32 %v1679_v56, %v1451_v7  ;;  %v1462_v27 = vadd.f32 %v1866_v12, %v1850_v15 }
 0x7b2   : > { %v1352_v28 = vpop.f32.mrf.mxu0 }
 0x7b3   : > { %1484 = vst [vmem:[%s2712_s7 + $0x20] sm:$0xff] %v1476_v23  ;;  %v1479_v59 = vadd.f32 %v1679_v56, %v1462_v27  ;;  %v1454_v16 = vadd.f32 %v1453_v21, %v1352_v28 }
 0x7b5   : > { %1487 = vst [vmem:[%s2712_s7 + $0x38] sm:$0xff] %v1479_v59  ;;  %v1477_v19 = vadd.f32 %v1679_v56, %v1454_v16 }
 0x7b7   : > { %1485 = vst [vmem:[%s2712_s7 + $0x28] sm:$0xff] %v1477_v19 }
 0x7b8   : > { %2189 = shalt.err (!%p2186_p9)
}
 0x7b9   : > { %s2190_s30 = scalar_lea.hbm %s2727_s10, 1024  ;;  %s2194_s14 = scalar_lea.hbm %s2778_s6, 2048 }
 0x7ba   : > { %p2191_p7 = scmp.ne.s32.totalorder %s2727_s10, %s2190_s30  ;;  %p2195_p2 = scmp.lt.s32.totalorder %s2727_s10, %s2778_s6 }
 0x7bb   : > { %p2196_p11 = scmp.lt.s32.totalorder %s2194_s14, %s2190_s30 }
 0x7bc   : > { %p2192_p4 = pnand %p2191_p7, %p2800_p0 }
 0x7bd   : > { %p2197_p13 = por %p2196_p11, %p2195_p2 }
 0x7be   : > { %p2193_p8 = pneg %p2192_p4 }
 0x7c0   : > { %p2198_p12 = pnand %p2197_p13, %p2193_p8 }
 0x7c2   : > { %2201 = shalt.err (!%p2198_p12)
}
 0x7c3   : > { %s2263_s15 = smov 128   ;;  %s2264_s20 = smov 8  }
 0x7c4   : > { %1889 = dma.vmem_to_hbm [thread:$0]  (%p2800_p0), %s2721_s17, 1024, %s2727_s10, %s1489_s19, %s2263_s15, %s2263_s15, %s2264_s20  }
 0x7c5 PF: > { %s1517_s25 = sand.u32 1, %s2236_s21   ;;  %p2801_p5 = scmp.ne.s32.totalorder %s2786_s28, 0 }
 0x7c6   : > { %p2802_p10 = scmp.ge.s32.totalorder %s2248_s24, 2  ;;  %s1518_s26 = scalar_lea.sflag [#allocation4], %s1517_s25 }
 0x7c8   : > { %p1906_p1 = pnand %p2802_p10, %p2801_p5 }
 0x7ca   : > { %p1907_p3 = pneg %p1906_p1 }
 0x7cc   : > { %2231 = dma.done.wait (%p1907_p3), %s1518_s26, 1024  }
 0x7cd   : > { %2233 = vsyncadd (%p1907_p3), %s1518_s26, 4294966272  ;;  %p21_p6 = scmp.ge.s32.totalorder %s2383_s13, 4   ;;  %s2803_s21 = smov %s2240_s22 }
 0x7ce   : > { %s2804_s22 = smov %s2244_s23  ;;  %s2805_s23 = smov %s2393_s16 }
 0x7cf   : > { %s2806_s24 = smov %s2383_s13  ;;  %23 = sbr.rel (!%p21_p6) target bundleno = 7 (0x7), region = 101 }
 0x7d4   :  { %1523 = vsyncpa [#allocation3], 1 }
 0x7d5   :  { %1525 = vsyncpa [#allocation3 + $0x1], 1 }
 0x7d6   :  { %1526 = vsyncpa [#allocation6], 1 }
 0x7d7   :  { %1527 = vsyncpa [#allocation9], 1 }
 0x7d8   :  { %1528 = vsyncpa [#allocation4], 1 }
 0x7d9   :  { %1530 = vsyncpa [#allocation4 + $0x1], 1 }

</bundles_post_ra>
